<compile_context>
chip_gen: v7x
topology: tpu7x:2x2x1
jax: 0.10.0
libtpu: 0.0.40
codegen_flags: <defaults>
</compile_context>

<pallas_src>
import jax
import jax.numpy as jnp
from jax.experimental import pallas as pl
from jax.experimental.pallas import tpu as pltpu


def _ensemble_kernel(x_ref, w1_ref, b1_ref, w2_ref, b2_ref, o_ref):
    K, H, _ = w2_ref.shape

    # Layer 1, fused across all K members: one wide MXU matmul (N = K*H).
    x = x_ref[...]                                               # (B, D_in)
    h = jnp.dot(x, w1_ref[...], preferred_element_type=jnp.float32)
    h = jnp.maximum(h + b1_ref[...], 0.0)                        # (B, K*H), f32

    # Layer 2: statically unrolled per-member matmuls (K is a small static
    # constant); column block k*H:(k+1)*H of h is member k's hidden state.
    outs = []
    for k in range(K):
        hk = h[:, k * H:(k + 1) * H].astype(w2_ref.dtype)
        yk = jnp.dot(hk, w2_ref[k], preferred_element_type=jnp.float32)
        outs.append(yk + b2_ref[k])                              # (B, D_out) f32

    # Single store of the whole (B, K*D_out) slab == torch.cat(dim=1).
    o_ref[...] = jnp.concatenate(outs, axis=1).astype(o_ref.dtype)


def net_ensemble_forward(x, w1, b1, w2, b2):
    """x: (B, D_in); w1: (K, D_in, H); b1: (K, 1, H); w2: (K, H, D_out);
    b2: (K, 1, D_out).  Returns (B, K*D_out) == torch.cat(member outputs, dim=1)."""
    K, D_in, H = w1.shape
    D_out = w2.shape[-1]
    B = x.shape[0]

    # Pure layout prep (done once, outside the kernel): fuse layer-1 params
    # across members.  Column k*H + h of w1_all is (member k, hidden unit h).
    w1_all = jnp.transpose(w1, (1, 0, 2)).reshape(D_in, K * H)
    b1_all = b1.reshape(1, K * H)

    vmem = pl.BlockSpec(memory_space=pltpu.MemorySpace.VMEM)
    return pl.pallas_call(
        _ensemble_kernel,
        out_shape=jax.ShapeDtypeStruct((B, K * D_out), x.dtype),
        in_specs=[vmem, vmem, vmem, vmem, vmem],
        out_specs=vmem,
    )(x, w1_all, b1_all, w2, b2)


def _ref_forward(x, w1, b1, w2, b2):
    outs = []
    for k in range(w1.shape[0]):
        h = jnp.maximum(x @ w1[k] + b1[k, 0], 0.0)
        outs.append(h @ w2[k] + b2[k, 0])
    return jnp.concatenate(outs, axis=1)


if __name__ == "__main__":
    K, B, D_in, H, D_out = 3, 2, 32, 64, 16

    key = jax.random.PRNGKey(0)
    kx, k1, k2, k3, k4 = jax.random.split(key, 5)
    x = jax.random.normal(kx, (B, D_in), dtype=jnp.float32)
    w1 = jax.random.normal(k1, (K, D_in, H), dtype=jnp.float32) * 0.1
    b1 = jax.random.normal(k2, (K, 1, H), dtype=jnp.float32) * 0.1
    w2 = jax.random.normal(k3, (K, H, D_out), dtype=jnp.float32) * 0.1
    b2 = jax.random.normal(k4, (K, 1, D_out), dtype=jnp.float32) * 0.1

    out = jax.jit(net_ensemble_forward)(x, w1, b1, w2, b2)
    out = jax.block_until_ready(out)

    ref = _ref_forward(x, w1, b1, w2, b2)
    assert out.shape == (B, K * D_out), out.shape
    assert jnp.allclose(out, ref, atol=1e-4, rtol=1e-4), "mismatch vs reference"

    print("KERNEL_OK")
</pallas_src>

<mosaic_0001>
module attributes {stable_mosaic.version = 11 : i64} {
  func.func @_ensemble_kernel(%arg0: memref<2x32xf32, #tpu.memory_space<vmem>>, %arg1: memref<32x192xf32, #tpu.memory_space<vmem>>, %arg2: memref<1x192xf32, #tpu.memory_space<vmem>>, %arg3: memref<3x64x16xf32, #tpu.memory_space<vmem>>, %arg4: memref<3x1x16xf32, #tpu.memory_space<vmem>>, %arg5: memref<2x48xf32, #tpu.memory_space<vmem>>) attributes {dimension_semantics = [], scalar_prefetch = 0 : i64, scratch_operands = 0 : i64, tpu.core_type = #tpu.core_type<tc>} {
    %c0 = arith.constant 0 : index
    %c0_0 = arith.constant 0 : index
    %0 = vector.load %arg0[%c0, %c0_0] : memref<2x32xf32, #tpu.memory_space<vmem>>, vector<2x32xf32>
    %c0_1 = arith.constant 0 : index
    %c0_2 = arith.constant 0 : index
    %1 = vector.load %arg1[%c0_1, %c0_2] : memref<32x192xf32, #tpu.memory_space<vmem>>, vector<32x192xf32>
    %cst = arith.constant dense<0.000000e+00> : vector<2x192xf32>
    %2 = tpu.matmul %0, %1, %cst {dimension_numbers = #tpu.dot_dimension_numbers<[1], [0], [0], [1], [0, 0, 1, 1], [], []>} : vector<2x32xf32>, vector<32x192xf32>, vector<2x192xf32> -> vector<2x192xf32>
    %c0_3 = arith.constant 0 : index
    %c0_4 = arith.constant 0 : index
    %3 = vector.load %arg2[%c0_3, %c0_4] : memref<1x192xf32, #tpu.memory_space<vmem>>, vector<1x192xf32>
    %4 = vector.broadcast %3 : vector<1x192xf32> to vector<2x192xf32>
    %5 = arith.addf %2, %4 : vector<2x192xf32>
    %cst_5 = arith.constant 0.000000e+00 : f32
    %6 = vector.broadcast %cst_5 : f32 to vector<2x192xf32>
    %7 = arith.maximumf %5, %6 : vector<2x192xf32>
    %8 = vector.extract_strided_slice %7 {offsets = [0, 0], sizes = [2, 64], strides = [1, 1]} : vector<2x192xf32> to vector<2x64xf32>
    %c0_6 = arith.constant 0 : index
    %c0_7 = arith.constant 0 : index
    %c0_8 = arith.constant 0 : index
    %9 = vector.load %arg3[%c0_6, %c0_7, %c0_8] : memref<3x64x16xf32, #tpu.memory_space<vmem>>, vector<1x64x16xf32>
    %10 = vector.shape_cast %9 : vector<1x64x16xf32> to vector<64x16xf32>
    %cst_9 = arith.constant dense<0.000000e+00> : vector<2x16xf32>
    %11 = tpu.matmul %8, %10, %cst_9 {dimension_numbers = #tpu.dot_dimension_numbers<[1], [0], [0], [1], [0, 0, 1, 1], [], []>} : vector<2x64xf32>, vector<64x16xf32>, vector<2x16xf32> -> vector<2x16xf32>
    %c0_10 = arith.constant 0 : index
    %c0_11 = arith.constant 0 : index
    %c0_12 = arith.constant 0 : index
    %12 = vector.load %arg4[%c0_10, %c0_11, %c0_12] : memref<3x1x16xf32, #tpu.memory_space<vmem>>, vector<1x1x16xf32>
    %13 = vector.shape_cast %12 : vector<1x1x16xf32> to vector<1x16xf32>
    %14 = vector.broadcast %13 : vector<1x16xf32> to vector<2x16xf32>
    %15 = arith.addf %11, %14 : vector<2x16xf32>
    %16 = vector.extract_strided_slice %7 {offsets = [0, 64], sizes = [2, 64], strides = [1, 1]} : vector<2x192xf32> to vector<2x64xf32>
    %c1 = arith.constant 1 : index
    %c0_13 = arith.constant 0 : index
    %c0_14 = arith.constant 0 : index
    %17 = vector.load %arg3[%c1, %c0_13, %c0_14] : memref<3x64x16xf32, #tpu.memory_space<vmem>>, vector<1x64x16xf32>
    %18 = vector.shape_cast %17 : vector<1x64x16xf32> to vector<64x16xf32>
    %cst_15 = arith.constant dense<0.000000e+00> : vector<2x16xf32>
    %19 = tpu.matmul %16, %18, %cst_15 {dimension_numbers = #tpu.dot_dimension_numbers<[1], [0], [0], [1], [0, 0, 1, 1], [], []>} : vector<2x64xf32>, vector<64x16xf32>, vector<2x16xf32> -> vector<2x16xf32>
    %c1_16 = arith.constant 1 : index
    %c0_17 = arith.constant 0 : index
    %c0_18 = arith.constant 0 : index
    %20 = vector.load %arg4[%c1_16, %c0_17, %c0_18] : memref<3x1x16xf32, #tpu.memory_space<vmem>>, vector<1x1x16xf32>
    %21 = vector.shape_cast %20 : vector<1x1x16xf32> to vector<1x16xf32>
    %22 = vector.broadcast %21 : vector<1x16xf32> to vector<2x16xf32>
    %23 = arith.addf %19, %22 : vector<2x16xf32>
    %24 = vector.extract_strided_slice %7 {offsets = [0, 128], sizes = [2, 64], strides = [1, 1]} : vector<2x192xf32> to vector<2x64xf32>
    %c2 = arith.constant 2 : index
    %c0_19 = arith.constant 0 : index
    %c0_20 = arith.constant 0 : index
    %25 = vector.load %arg3[%c2, %c0_19, %c0_20] : memref<3x64x16xf32, #tpu.memory_space<vmem>>, vector<1x64x16xf32>
    %26 = vector.shape_cast %25 : vector<1x64x16xf32> to vector<64x16xf32>
    %cst_21 = arith.constant dense<0.000000e+00> : vector<2x16xf32>
    %27 = tpu.matmul %24, %26, %cst_21 {dimension_numbers = #tpu.dot_dimension_numbers<[1], [0], [0], [1], [0, 0, 1, 1], [], []>} : vector<2x64xf32>, vector<64x16xf32>, vector<2x16xf32> -> vector<2x16xf32>
    %c2_22 = arith.constant 2 : index
    %c0_23 = arith.constant 0 : index
    %c0_24 = arith.constant 0 : index
    %28 = vector.load %arg4[%c2_22, %c0_23, %c0_24] : memref<3x1x16xf32, #tpu.memory_space<vmem>>, vector<1x1x16xf32>
    %29 = vector.shape_cast %28 : vector<1x1x16xf32> to vector<1x16xf32>
    %30 = vector.broadcast %29 : vector<1x16xf32> to vector<2x16xf32>
    %31 = arith.addf %27, %30 : vector<2x16xf32>
    %32 = tpu.concatenate %15, %23, %31 in 1 : vector<2x16xf32>, vector<2x16xf32>, vector<2x16xf32> -> vector<2x48xf32>
    %c0_25 = arith.constant 0 : index
    %c0_26 = arith.constant 0 : index
    %33 = vector.load %arg5[%c0_25, %c0_26] : memref<2x48xf32, #tpu.memory_space<vmem>>, vector<2x48xf32>
    tpu.vector_store %arg5[%c0_25, %c0_26], %32 {strides = array<i32>} : memref<2x48xf32, #tpu.memory_space<vmem>>, vector<2x48xf32>,
    return
  }
}

</mosaic_0001>

<bundles_post_ra>
// kernel: net_ensemble_forward.1
= control target key start
LH: loop header
LB: loop body
LE: loop exit
PB: predicated region body
PF: predicated region fallthrough
CT: control target
= control target key end

     0   :  { %v600_v7 = vmov 0.0   ;;  %v601_v8 = vmov 0.0|0.0   ;;  %s784_s0 = inlined_call_operand.vmem [shape: f32[2,32], index: 0, kind: input, shape index: {}]   ;;  %s785_s1 = inlined_call_operand.vmem [shape: f32[32,192], index: 1, kind: input, shape index: {}]   ;;  %s786_s2 = inlined_call_operand.vmem [shape: f32[1,192], index: 2, kind: input, shape index: {}]   ;;  %s787_s3 = inlined_call_operand.vmem [shape: f32[3,64,16], index: 3, kind: input, shape index: {}]   ;;  %s788_s4 = inlined_call_operand.vmem [shape: f32[3,1,16], index: 4, kind: input, shape index: {}]   ;;  %s789_s5 = inlined_call_operand.hbm [shape: f32[2,48], index: 5, kind: output, shape index: {}]  }
   0x1   :  { %v23_v0 = vld [vmem:[%s785_s1 + $0x8] sm:$0xff]  ;;  %v25_v1 = vld [vmem:[%s785_s1 + $0x18] sm:$0xff]  ;;  %v22_v2 = vld [vmem:[%s785_s1] sm:$0xff]  ;;  %110 = vmatprep.mubr.f32.mxu0 %v600_v7  ;;  %533 = vmatprep.subr.bf16.mxu1 %v601_v8 }
   0x2   :  { %v525_v3 = vpack.c.bf16 %v25_v1, %v23_v0  ;;  %v24_v4 = vld [vmem:[%s785_s1 + $0x10] sm:$0xff]  ;;  %v27_v5 = vld [vmem:[%s785_s1 + $0x28] sm:$0xff]  ;;  %v29_v6 = vld [vmem:[%s785_s1 + $0x38] sm:$0xff] }
   0x3   :  { %v527_v9 = vpack.c.bf16 %v24_v4, %v22_v2  ;;  %v529_v10 = vpack.c.bf16 %v29_v6, %v27_v5  ;;  %v26_v11 = vld [vmem:[%s785_s1 + $0x20] sm:$0xff]  ;;  %v28_v12 = vld [vmem:[%s785_s1 + $0x30] sm:$0xff]  ;;  %v120_v14 = vld [vmem:[%s787_s3 + $0x8] sm:$0xff] }
   0x4   :  { %526 = vmatprep.subr.bf16.mxu0 %v525_v3  ;;  %v119_v13 = vld [vmem:[%s787_s3] sm:$0xff]  ;;  %v121_v15 = vld [vmem:[%s787_s3 + $0x10] sm:$0xff]  ;;  %v531_v16 = vpack.c.bf16 %v28_v12, %v26_v11  ;;  %v122_v18 = vld [vmem:[%s787_s3 + $0x18] sm:$0xff] }
   0x5   :  { %528 = vmatpush1.bf16.msra.mxu0 %v527_v9  ;;  %v534_v17 = vpack.c.bf16 %v120_v14, %v119_v13 }
   0x6   :  { %530 = vmatprep.subr.bf16.mxu0 %v529_v10 }
   0x7   :  { %10 = vsyncpa [#allocation3], 0  ;;  %535 = vmatpush3.bf16.msra.mxu1 %v534_v17  ;;  %v537_v19 = vpack.c.bf16 %v122_v18, %v121_v15  ;;  %v123_v20 = vld [vmem:[%s787_s3 + $0x20] sm:$0xff]  ;;  %v124_v21 = vld [vmem:[%s787_s3 + $0x28] sm:$0xff]  ;;  %vm42_vm0 = vcmask 261120   ;;  %vm602_vm1 = vmmov 0   ;;  %v32_v39 = vlaneseq }
   0x8   :  { %536 = vmatprep.subr.bf16.mxu1 %v601_v8  ;;  %v21_v22 = vld [vmem:[%s784_s0] sm:$0x3]  ;;  %v540_v23 = vpack.c.bf16 %v124_v21, %v123_v20  ;;  %v125_v24 = vld [vmem:[%s787_s3 + $0x30] sm:$0xff]  ;;  %v126_v25 = vld [vmem:[%s787_s3 + $0x38] sm:$0xff]  ;;  %484 = vmatprep.mubr.msk.f32.mxu1 %vm602_vm1, %v600_v7  ;;  %vm134_vm2 = vcmask 523264   ;;  %s603_s24 = smov 64  }
   0x9   :  { %532 = vmatpush1.bf16.msra.mxu0 %v531_v16  ;;  %v543_v26 = vpack.c.bf16 %v126_v25, %v125_v24  ;;  %v419_v27 = vld [vmem:[%s787_s3 + $0x40] sm:$0xff]  ;;  %v420_v28 = vld [vmem:[%s787_s3 + $0x48] sm:$0xff]  ;;  %v421_v29 = vld [vmem:[%s787_s3 + $0x50] sm:$0xff]  ;;  %v33_v40 = vshrl.u32 %v32_v39, 7  ;;  %s605_s11 = smov 16   ;;  %vm397_vm3 = vcmask 130048  }
   0xa   :  { %545 = vmatprep.subr.bf16.mxu0 %v601_v8  ;;  %v546_v30 = vpack.c.bf16 %v420_v28, %v419_v27  ;;  %v422_v31 = vld [vmem:[%s787_s3 + $0x58] sm:$0xff]  ;;  %v423_v33 = vld [vmem:[%s787_s3 + $0x60] sm:$0xff]  ;;  %v424_v34 = vld [vmem:[%s787_s3 + $0x68] sm:$0xff]  ;;  %s606_s14 = smov [#allocation2]   ;;  %vm400_vm4 = vcmask 386048  }
   0xb   :  { %538 = vmatpush3.bf16.msra.mxu1 %v537_v19  ;;  %v549_v32 = vpack.c.bf16 %v422_v31, %v421_v29  ;;  %v552_v35 = vpack.c.bf16 %v424_v34, %v423_v33  ;;  %v425_v36 = vld [vmem:[%s787_s3 + $0x70] sm:$0xff]  ;;  %v426_v37 = vld [vmem:[%s787_s3 + $0x78] sm:$0xff]  ;;  %v34_v41 = vsub.s32 0, %v33_v40  ;;  %v30_v42 = vld [vmem:[%s786_s2] sm:$0x3]  ;;  %v38_v54 = vsub.s32 1, %v33_v40 }
   0xc   :  { %416 = vmatmul.mubr.msk.f32.vlgmr.msra.gmra.mrb[0].mxu0 %vm42_vm0, %v21_v22  ;;  %539 = vmatprep.subr.bf16.mxu1 %v601_v8  ;;  %v555_v38 = vpack.c.bf16 %v426_v37, %v425_v36  ;;  %v430_v44 = vld [vmem:[%s787_s3 + $0x80] sm:$0xff]  ;;  %v431_v45 = vld [vmem:[%s787_s3 + $0x88] sm:$0xff]  ;;  %v432_v51 = vld [vmem:[%s787_s3 + $0x90] sm:$0xff]  ;;  %s408_s15 = sshll.u32 %s606_s14, 4  ;;  %s409_s15 = int_to_ptr.vmem [resolvable:$true] %s408_s15 }
   0xd   :  { %503 = vmatprep.mubr.msk.f32.mxu0 %vm602_vm1, %v600_v7  ;;  %547 = vmatpush3.bf16.msra.mxu0 %v546_v30  ;;  %v35_v43 = vrot.slane %v30_v42, %v34_v41  ;;  %v558_v49 = vpack.c.bf16 %v431_v45, %v430_v44  ;;  %v433_v52 = vld [vmem:[%s787_s3 + $0x98] sm:$0xff]  ;;  %v434_v55 = vld [vmem:[%s787_s3 + $0xa0] sm:$0xff]  ;;  %v435_v56 = vld [vmem:[%s787_s3 + $0xa8] sm:$0xff]  ;;  %v39_v58 = vrot.slane %v30_v42, %v38_v54  ;;  %s576_s16 = scalar_lea.vmem %s409_s15, 32  ;;  %p581_p1 = scmp.lt.s32.totalorder %s409_s15, %s409_s15 }
   0xe   :  { %548 = vmatprep.subr.bf16.mxu0 %v601_v8  ;;  %v561_v53 = vpack.c.bf16 %v433_v52, %v432_v51  ;;  %v564_v57 = vpack.c.bf16 %v435_v56, %v434_v55  ;;  %v436_v59 = vld [vmem:[%s787_s3 + $0xb0] sm:$0xff]  ;;  %v437_v60 = vld [vmem:[%s787_s3 + $0xb8] sm:$0xff]  ;;  %v439_v3 = vld [vmem:[%s788_s4 + $0x2] ss:$0 sm:$0xff]  ;;  %s604_s3 = smov 32   ;;  %p577_p0 = scmp.ne.s32.totalorder %s409_s15, %s576_s16 }
   0xf   :  { %541 = vmatpush3.bf16.msra.mxu1 %v540_v23  ;;  %v567_v61 = vpack.c.bf16 %v437_v60, %v436_v59  ;;  %v417_v11 = vld [vmem:[%s788_s4] ss:$0 sm:$0xff]  ;;  %p582_p2 = scmp.lt.s32.totalorder %s576_s16, %s576_s16 }
  0x10   :  { %542 = vmatprep.subr.bf16.mxu1 %v601_v8 }
  0x11   :  { %550 = vmatpush3.bf16.msra.mxu0 %v549_v32  ;;  %p583_p3 = por %p582_p2, %p581_p1 }
  0x12   :  { %551 = vmatprep.subr.bf16.mxu0 %v601_v8 }
  0x13   :  { %544 = vmatpush3.bf16.msra.mxu1 %v543_v26  ;;  %p584_p4 = pnand %p583_p3, %p577_p0 }
  0x14   :  { %557 = vmatprep.subr.bf16.mxu1 %v601_v8 }
  0x15   :  { %553 = vmatpush3.bf16.msra.mxu0 %v552_v35 }
  0x16   :  { %554 = vmatprep.subr.bf16.mxu0 %v601_v8 }
  0x19   :  { %556 = vmatpush3.bf16.msra.mxu0 %v555_v38 }
  0xdf   :  { %v112_v46 = vpop.f32.mrb[0].mxu0 }
  0xe0   :  { %v113_v47 = vadd.f32 %v112_v46, %v35_v43  ;;  %v114_v48 = vpop.f32.mrb[1].mxu0 }
  0xe1   :  { %v115_v62 = vadd.f32 %v114_v48, %v39_v58 }
  0xe2   :  { %v117_v50 = vmax.f32 %v113_v47, 0.0 }
  0xe3   :  { %v118_v63 = vmax.f32 %v115_v62, 0.0 }
  0xe4   :  { %225 = vrot.lane.b32.xlu0 %v117_v50, %s603_s24  ;;  %485 = vmatmul.mubr.msk.f32.vlgmr.msra.gmra.mrb[0].mxu1 %vm134_vm2, %v117_v50 }
  0xe5   :  { %559 = vmatpush3.bf16.msra.mxu1 %v558_v49  ;;  %522 = vmatprep.mubr.msk.f32.mxu1 %vm602_vm1, %v600_v7  ;;  %v428_v7 = vld [vmem:[%s788_s4 + $0x1] ss:$0 sm:$0xff] }
  0xe6   :  { %560 = vmatprep.subr.bf16.mxu1 %v601_v8 }
  0xe9   :  { %562 = vmatpush3.bf16.msra.mxu1 %v561_v53 }
  0xea   :  { %563 = vmatprep.subr.bf16.mxu1 %v601_v8 }
  0xed   :  { %565 = vmatpush3.bf16.msra.mxu1 %v564_v57 }
  0xee   :  { %566 = vmatprep.subr.bf16.mxu1 %v601_v8 }
  0xf1   :  { %568 = vmatpush3.bf16.msra.mxu1 %v567_v61 }
  0xf4   :  { %523 = vmatmul.mubr.msk.f32.vlgmr.msra.gmra.mrb[2].mxu1 %vm134_vm2, %v118_v63 }
 0x156   :  { %v226_v0 = vpop.permute.xlu0 %225 }
 0x157   :  { %504 = vmatmul.mubr.msk.f32.vlgmr.msra.gmra.mrb[2].mxu0 %vm134_vm2, %v226_v0 }
 0x1b7   :  { %v204_v1 = vpop.f32.mrb[0].mxu1 }
 0x1b8   :  { %v486_v2 = vpop.f32.mrb[1].mxu1  ;;  %v205_v12 = vadd.f32 %v417_v11, %v204_v1 }
 0x1c7   :  { %v385_v4 = vpop.f32.mrb[2].mxu1 }
 0x1c8   :  { %v386_v5 = vadd.f32 %v439_v3, %v385_v4  ;;  %v524_v6 = vpop.f32.mrb[3].mxu1 }
 0x1ca   :  { %394 = vrot.lane.b32.xlu1 %v386_v5, %s604_s3 }
 0x22a   :  { %v295_v8 = vpop.f32.mrb[2].mxu0 }
 0x22b   :  { %v296_v9 = vadd.f32 %v428_v7, %v295_v8  ;;  %v505_v10 = vpop.f32.mrb[3].mxu0 }
 0x22d   :  { %390 = vrot.lane.b32.xlu0 %v296_v9, %s605_s11 }
 0x23c   :  { %v395_v14 = vpop.permute.xlu1 %394 }
 0x29f   :  { %v391_v13 = vpop.permute.xlu0 %390 }
 0x2a0   :  { %v398_v15 = vsel %vm397_vm3, %v205_v12, %v391_v13 }
 0x2a1   :  { %v399_v16 = vsel %vm42_vm0, %v398_v15, %v395_v14 }
 0x2a2   :  { %401 = vst.msk [vmem:[#allocation2] sm:$0x3] %vm400_vm4, %v399_v16 }
 0x2a3   :  { %587 = shalt.err (!%p584_p4)
}
 0x2a4   :  { %s588_s17 = scalar_lea.hbm %s789_s5, 32 }
 0x2a5   :  { %p589_p5 = scmp.ne.s32.totalorder %s789_s5, %s588_s17  ;;  %p592_p6 = scmp.lt.u32.totalorder %s588_s17, %s789_s5 }
 0x2a7   :  { %p594_p7 = pnand %p592_p6, %p589_p5 }
 0x2a9   :  { %597 = shalt.err (!%p594_p7)
}
 0x2aa   :  { %411 = dma.vmem_to_hbm [thread:$0]  %s409_s15, 32, %s789_s5, [#allocation3]  }
 0x2ab   :  { %598 = dma.done.wait [#allocation3], 32  }
 0x2ac   :  { %599 = vsyncadd [#allocation3], 4294967264 }
 0x2ad   :  { %415 = vsyncpa [#allocation3], 1 }

</bundles_post_ra>
